<compile_context>
chip_gen: v5e
topology: v5e:2x2
jax: 0.10.0
libtpu: 0.0.40
codegen_flags: <defaults>
</compile_context>

<pallas_src>
import functools
import math

import jax
import jax.numpy as jnp
from jax.experimental import pallas as pl
from jax.experimental.pallas import tpu as pltpu

BN_EPS = 1e-5  # nn.BatchNorm2d default eps

_COMPILER = pltpu.CompilerParams(
    dimension_semantics=("parallel",),
    vmem_limit_bytes=48 * 1024 * 1024,
)


def _cdiv(a, b):
    return -(-a // b)


def _round_up(a, b):
    return _cdiv(a, b) * b


# --------------------------------------------------------------------------
# In-kernel helper: per-tile partial BN statistics (sum, sum of squares).
# Rows at/after `m_valid` (ragged last tile) are masked BEFORE squaring so
# arbitrary garbage in out-of-range rows cannot poison the sums.
# --------------------------------------------------------------------------
def _stats(y, *, tm, m_valid, masked):
    if masked:
        rows = pl.program_id(0) * tm + jax.lax.broadcasted_iota(
            jnp.int32, y.shape, 0)
        y = jnp.where(rows < m_valid, y, 0.0)
    s = jnp.sum(y, axis=0, keepdims=True)        # (1, C)
    ss = jnp.sum(y * y, axis=0, keepdims=True)   # (1, C)
    return s, ss


# --------------------------------------------------------------------------
# Host-side fold: packed-channel (sum, sumsq) -> packed per-channel affine
# such that  BN(y) == y * scale + shift  (training-mode BN, biased variance).
# --------------------------------------------------------------------------
def _bn_fold(s_packed, ss_packed, count, gamma, beta, g):
    d = gamma.shape[0]
    s = jnp.sum(s_packed.reshape(g, d), axis=0)
    ss = jnp.sum(ss_packed.reshape(g, d), axis=0)
    mean = s / count
    var = ss / count - mean * mean               # biased variance
    scale = gamma * jax.lax.rsqrt(var + BN_EPS)
    shift = beta - mean * scale
    return (jnp.tile(scale, g).reshape(1, g * d).astype(jnp.float32),
            jnp.tile(shift, g).reshape(1, g * d).astype(jnp.float32))


# --------------------------------------------------------------------------
# Pass A: stats of YS = HS@Wxs and YT = HT@Wxt + b_xt (nothing materialized).
# --------------------------------------------------------------------------
def _proj_stats_kernel(hs_ref, ht_ref, wxs_ref, wxt_ref, bxt_ref, ps_ref,
                       *, tm, m_valid, masked, c):
    hs = hs_ref[...].astype(jnp.bfloat16)
    ht = ht_ref[...].astype(jnp.bfloat16)
    ys = jnp.dot(hs, wxs_ref[...], preferred_element_type=jnp.float32)
    yt = jnp.dot(ht, wxt_ref[...], preferred_element_type=jnp.float32)
    yt = yt + bxt_ref[...]
    s_s, ss_s = _stats(ys, tm=tm, m_valid=m_valid, masked=masked)
    s_t, ss_t = _stats(yt, tm=tm, m_valid=m_valid, masked=masked)
    ps_ref[0, :, 0 * c:1 * c] = s_s
    ps_ref[0, :, 1 * c:2 * c] = ss_s
    ps_ref[0, :, 2 * c:3 * c] = s_t
    ps_ref[0, :, 3 * c:4 * c] = ss_t


# --------------------------------------------------------------------------
# Pass B: recompute YS/YT, apply BN_xs/BN_xt, gated fusion, FC_h layer-1
# matmul; store y1 (bf16) and its partial stats.
# --------------------------------------------------------------------------
def _gate_fc1_kernel(hs_ref, ht_ref, wxs_ref, wxt_ref, bxt_ref,
                     scs_ref, shs_ref, sct_ref, sht_ref, w1_ref, b1_ref,
                     y1_ref, ps_ref, *, tm, m_valid, masked, c):
    hs = hs_ref[...]
    ht = ht_ref[...]
    ys = jnp.dot(hs.astype(jnp.bfloat16), wxs_ref[...],
                 preferred_element_type=jnp.float32)
    yt = jnp.dot(ht.astype(jnp.bfloat16), wxt_ref[...],
                 preferred_element_type=jnp.float32) + bxt_ref[...]
    xs = ys * scs_ref[...] + shs_ref[...]        # BN_xs(YS)
    xt = yt * sct_ref[...] + sht_ref[...]        # BN_xt(YT)
    z = jax.nn.sigmoid(xs + xt)
    h = z * hs + (1.0 - z) * ht                  # gate uses full-precision HS/HT
    y1 = jnp.dot(h.astype(jnp.bfloat16), w1_ref[...],
                 preferred_element_type=jnp.float32) + b1_ref[...]
    y1_ref[...] = y1.astype(y1_ref.dtype)
    s, ss = _stats(y1, tm=tm, m_valid=m_valid, masked=masked)
    ps_ref[0, :, 0:c] = s
    ps_ref[0, :, c:2 * c] = ss


# --------------------------------------------------------------------------
# Pass C: h1 = relu(BN_h1(y1)); y2 = h1@W2 + b2 -> stats only (y2 not stored).
# --------------------------------------------------------------------------
def _fc2_stats_kernel(y1_ref, sc1_ref, sh1_ref, w2_ref, b2_ref, ps_ref,
                      *, tm, m_valid, masked, c):
    y1 = y1_ref[...].astype(jnp.float32)
    h1 = jnp.maximum(y1 * sc1_ref[...] + sh1_ref[...], 0.0)
    y2 = jnp.dot(h1.astype(jnp.bfloat16), w2_ref[...],
                 preferred_element_type=jnp.float32) + b2_ref[...]
    s, ss = _stats(y2, tm=tm, m_valid=m_valid, masked=masked)
    ps_ref[0, :, 0:c] = s
    ps_ref[0, :, c:2 * c] = ss


# --------------------------------------------------------------------------
# Pass D: recompute y2 from y1 and apply the final BN_h2 affine.
# --------------------------------------------------------------------------
def _fc2_apply_kernel(y1_ref, sc1_ref, sh1_ref, w2_ref, b2_ref,
                      sc2_ref, sh2_ref, o_ref):
    y1 = y1_ref[...].astype(jnp.float32)
    h1 = jnp.maximum(y1 * sc1_ref[...] + sh1_ref[...], 0.0)
    y2 = jnp.dot(h1.astype(jnp.bfloat16), w2_ref[...],
                 preferred_element_type=jnp.float32) + b2_ref[...]
    o_ref[...] = y2 * sc2_ref[...] + sh2_ref[...]


# --------------------------------------------------------------------------
# Full forward pass
# --------------------------------------------------------------------------
def gated_fusion(HS, HT, params, *, tm=2048):
    B, T, N, D = HS.shape
    M = B * T * N

    # ---- lane-dense repack: (M, D) -> (M/g, g*D), free row-major reshape ----
    if D < 128 and 128 % D == 0:
        g = math.gcd(128 // D, M)
    else:
        g = 1
    C = g * D
    Mp = M // g                                   # packed row count

    hs = HS.reshape(Mp, C)
    ht = HT.reshape(Mp, C)

    # ---- row tiling (no host-side padding; ragged last tile is masked) ----
    tm = min(int(tm), _round_up(Mp, 8))
    tm = _round_up(max(tm, 8), 8)
    n_tiles = _cdiv(Mp, tm)
    masked = (n_tiles * tm) != Mp

    # ---- packed block-diagonal weights (bf16) and packed vectors (fp32) ----
    def pack_w(w):
        wb = w if g == 1 else jnp.kron(jnp.eye(g, dtype=w.dtype), w)
        return wb.astype(jnp.bfloat16)

    def pack_v(v):
        return jnp.tile(v, g).reshape(1, C).astype(jnp.float32)

    w_xs, w_xt = pack_w(params["w_xs"]), pack_w(params["w_xt"])
    w_h1, w_h2 = pack_w(params["w_h1"]), pack_w(params["w_h2"])
    b_xt, b_h1, b_h2 = (pack_v(params["b_xt"]), pack_v(params["b_h1"]),
                        pack_v(params["b_h2"]))

    row_spec = pl.BlockSpec((tm, C), lambda i: (i, 0))
    w_spec = pl.BlockSpec((C, C), lambda i: (0, 0))
    vec_spec = pl.BlockSpec((1, C), lambda i: (0, 0))
    ps2_spec = pl.BlockSpec((1, 1, 2 * C), lambda i: (i, 0, 0))
    ps4_spec = pl.BlockSpec((1, 1, 4 * C), lambda i: (i, 0, 0))

    common = dict(tm=tm, m_valid=Mp, masked=masked, c=C)

    # ---- Pass A: projection stats only ----
    psA = pl.pallas_call(
        functools.partial(_proj_stats_kernel, **common),
        out_shape=jax.ShapeDtypeStruct((n_tiles, 1, 4 * C), jnp.float32),
        grid=(n_tiles,),
        in_specs=[row_spec, row_spec, w_spec, w_spec, vec_spec],
        out_specs=ps4_spec,
        compiler_params=_COMPILER,
    )(hs, ht, w_xs, w_xt, b_xt)

    totA = jnp.sum(psA[:, 0, :], axis=0)                       # (4C,)
    sc_xs, sh_xs = _bn_fold(totA[0 * C:1 * C], totA[1 * C:2 * C], M,
                            params["g_xs"], params["be_xs"], g)
    sc_xt, sh_xt = _bn_fold(totA[2 * C:3 * C], totA[3 * C:4 * C], M,
                            params["g_xt"], params["be_xt"], g)

    # ---- Pass B: gate + FC_h layer 1 + stats ----
    y1, ps1 = pl.pallas_call(
        functools.partial(_gate_fc1_kernel, **common),
        out_shape=(jax.ShapeDtypeStruct((Mp, C), jnp.bfloat16),
                   jax.ShapeDtypeStruct((n_tiles, 1, 2 * C), jnp.float32)),
        grid=(n_tiles,),
        in_specs=[row_spec, row_spec, w_spec, w_spec, vec_spec,
                  vec_spec, vec_spec, vec_spec, vec_spec, w_spec, vec_spec],
        out_specs=(row_spec, ps2_spec),
        compiler_params=_COMPILER,
    )(hs, ht, w_xs, w_xt, b_xt, sc_xs, sh_xs, sc_xt, sh_xt, w_h1, b_h1)

    tot1 = jnp.sum(ps1[:, 0, :], axis=0)
    sc1, sh1 = _bn_fold(tot1[:C], tot1[C:], M,
                        params["g_h1"], params["be_h1"], g)

    # ---- Pass C: relu(BN_h1) + FC_h layer 2 -> stats only ----
    ps2 = pl.pallas_call(
        functools.partial(_fc2_stats_kernel, **common),
        out_shape=jax.ShapeDtypeStruct((n_tiles, 1, 2 * C), jnp.float32),
        grid=(n_tiles,),
        in_specs=[row_spec, vec_spec, vec_spec, w_spec, vec_spec],
        out_specs=ps2_spec,
        compiler_params=_COMPILER,
    )(y1, sc1, sh1, w_h2, b_h2)

    tot2 = jnp.sum(ps2[:, 0, :], axis=0)
    sc2, sh2 = _bn_fold(tot2[:C], tot2[C:], M,
                        params["g_h2"], params["be_h2"], g)

    # ---- Pass D: recompute y2 and apply final BN_h2 affine ----
    out = pl.pallas_call(
        _fc2_apply_kernel,
        out_shape=jax.ShapeDtypeStruct((Mp, C), jnp.float32),
        grid=(n_tiles,),
        in_specs=[row_spec, vec_spec, vec_spec, w_spec, vec_spec,
                  vec_spec, vec_spec],
        out_specs=row_spec,
        compiler_params=_COMPILER,
    )(y1, sc1, sh1, w_h2, b_h2, sc2, sh2)

    # Packed (Mp, g*D) row-major layout is bit-identical to (B, T, N, D).
    return out.reshape(B, T, N, D)


# --------------------------------------------------------------------------
# Parameters (matching the PyTorch module's __init__ / init schemes)
# --------------------------------------------------------------------------
def init_params(key, D):
    def xavier(k, cin, cout):
        # xavier_uniform on a (cout, cin, 1, 1) conv weight: bound = sqrt(6/(cin+cout))
        bound = math.sqrt(6.0 / (cin + cout))
        return jax.random.uniform(k, (cin, cout), jnp.float32, -bound, bound)

    ks = jax.random.split(key, 4)
    zeros = jnp.zeros((D,), jnp.float32)
    ones = jnp.ones((D,), jnp.float32)
    return {
        # FC_xs: 1x1 conv (no bias) + BN
        "w_xs": xavier(ks[0], D, D), "g_xs": ones, "be_xs": zeros,
        # FC_xt: 1x1 conv (bias -> zeros_) + BN
        "w_xt": xavier(ks[1], D, D), "b_xt": zeros, "g_xt": ones, "be_xt": zeros,
        # FC_h layer 1: conv + BN + relu
        "w_h1": xavier(ks[2], D, D), "b_h1": zeros, "g_h1": ones, "be_h1": zeros,
        # FC_h layer 2: conv + BN (no activation)
        "w_h2": xavier(ks[3], D, D), "b_h2": zeros, "g_h2": ones, "be_h2": zeros,
    }


# Pure-JAX fp32 reference (training-mode BN, biased variance).
def reference(HS, HT, params):
    def bn(x, gamma, beta):
        mean = jnp.mean(x, axis=(0, 1, 2))
        var = jnp.var(x, axis=(0, 1, 2))
        return (x - mean) * (gamma * jax.lax.rsqrt(var + BN_EPS)) + beta

    XS = bn(HS @ params["w_xs"], params["g_xs"], params["be_xs"])
    XT = bn(HT @ params["w_xt"] + params["b_xt"], params["g_xt"], params["be_xt"])
    z = jax.nn.sigmoid(XS + XT)
    H = z * HS + (1.0 - z) * HT
    H1 = jnp.maximum(
        bn(H @ params["w_h1"] + params["b_h1"], params["g_h1"], params["be_h1"]), 0.0)
    return bn(H1 @ params["w_h2"] + params["b_h2"], params["g_h2"], params["be_h2"])


if __name__ == "__main__":
    # (batch, num_step, num_nodes, D): M=320 rows, D=16 packs to a lane-dense
    # (40, 128) slab; tm=16 gives 3 row tiles and a ragged (masked) last tile,
    # exercising both the pipelining and the edge-row statistics masking.
    B, T, N, D = 2, 8, 20, 16
    root = jax.random.PRNGKey(0)
    k_hs, k_ht, k_p = jax.random.split(root, 3)
    HS = jax.random.normal(k_hs, (B, T, N, D), jnp.float32)
    HT = jax.random.normal(k_ht, (B, T, N, D), jnp.float32)
    params = init_params(k_p, D)

    fwd = jax.jit(functools.partial(gated_fusion, tm=16))
    out = jax.block_until_ready(fwd(HS, HT, params))

    ref = reference(HS, HT, params)
    assert out.shape == (B, T, N, D)
    assert bool(jnp.all(jnp.isfinite(out)))
    max_err = float(jnp.max(jnp.abs(out - ref)))
    mean_err = float(jnp.mean(jnp.abs(out - ref)))
    # bf16 matmul operands / bf16 y1 intermediate => small deviation from fp32.
    assert max_err < 0.5 and mean_err < 0.1, (max_err, mean_err)
    print("KERNEL_OK")
</pallas_src>

<mosaic_0001>
module attributes {stable_mosaic.version = 11 : i64} {
  func.func @_proj_stats_kernel(%arg0: i32, %arg1: memref<16x128xf32, #tpu.memory_space<vmem>>, %arg2: memref<16x128xf32, #tpu.memory_space<vmem>>, %arg3: memref<128x128xbf16, #tpu.memory_space<vmem>>, %arg4: memref<128x128xbf16, #tpu.memory_space<vmem>>, %arg5: memref<1x128xf32, #tpu.memory_space<vmem>>, %arg6: memref<1x1x512xf32, #tpu.memory_space<vmem>>) attributes {dimension_semantics = [#tpu.dimension_semantics<parallel>], iteration_bounds = array<i64: 3>, scalar_prefetch = 0 : i64, scratch_operands = 0 : i64, tpu.core_type = #tpu.core_type<tc>, window_params = [{transform_indices = @transform_0, window_bounds = array<i64: 16, 128>}, {transform_indices = @transform_1, window_bounds = array<i64: 16, 128>}, {pipeline_mode = #tpu.pipeline_mode<synchronous>, transform_indices = @transform_2, window_bounds = array<i64: 128, 128>}, {pipeline_mode = #tpu.pipeline_mode<synchronous>, transform_indices = @transform_3, window_bounds = array<i64: 128, 128>}, {pipeline_mode = #tpu.pipeline_mode<synchronous>, transform_indices = @transform_4, window_bounds = array<i64: 1, 128>}, {transform_indices = @transform_5, window_bounds = array<i64: 1, 1, 512>}]} {
    %c0 = arith.constant 0 : index
    %c0_0 = arith.constant 0 : index
    %0 = vector.load %arg1[%c0, %c0_0] : memref<16x128xf32, #tpu.memory_space<vmem>>, vector<16x128xf32>
    %1 = arith.truncf %0 : vector<16x128xf32> to vector<16x128xbf16>
    %c0_1 = arith.constant 0 : index
    %c0_2 = arith.constant 0 : index
    %2 = vector.load %arg2[%c0_1, %c0_2] : memref<16x128xf32, #tpu.memory_space<vmem>>, vector<16x128xf32>
    %3 = arith.truncf %2 : vector<16x128xf32> to vector<16x128xbf16>
    %c0_3 = arith.constant 0 : index
    %c0_4 = arith.constant 0 : index
    %4 = vector.load %arg3[%c0_3, %c0_4] : memref<128x128xbf16, #tpu.memory_space<vmem>>, vector<128x128xbf16>
    %cst = arith.constant dense<0.000000e+00> : vector<16x128xf32>
    %5 = tpu.matmul %1, %4, %cst {dimension_numbers = #tpu.dot_dimension_numbers<[1], [0], [0], [1], [0, 0, 1, 1], [], []>} : vector<16x128xbf16>, vector<128x128xbf16>, vector<16x128xf32> -> vector<16x128xf32>
    %c0_5 = arith.constant 0 : index
    %c0_6 = arith.constant 0 : index
    %6 = vector.load %arg4[%c0_5, %c0_6] : memref<128x128xbf16, #tpu.memory_space<vmem>>, vector<128x128xbf16>
    %cst_7 = arith.constant dense<0.000000e+00> : vector<16x128xf32>
    %7 = tpu.matmul %3, %6, %cst_7 {dimension_numbers = #tpu.dot_dimension_numbers<[1], [0], [0], [1], [0, 0, 1, 1], [], []>} : vector<16x128xbf16>, vector<128x128xbf16>, vector<16x128xf32> -> vector<16x128xf32>
    %c0_8 = arith.constant 0 : index
    %c0_9 = arith.constant 0 : index
    %8 = vector.load %arg5[%c0_8, %c0_9] : memref<1x128xf32, #tpu.memory_space<vmem>>, vector<1x128xf32>
    %9 = vector.broadcast %8 : vector<1x128xf32> to vector<16x128xf32>
    %10 = arith.addf %7, %9 : vector<16x128xf32>
    %c16_i32 = arith.constant 16 : i32
    %11 = arith.muli %arg0, %c16_i32 : i32
    %12 = tpu.iota {dimensions = array<i32: 0>} : vector<16x128xi32>
    %13 = vector.broadcast %11 : i32 to vector<16x128xi32>
    %14 = arith.addi %13, %12 : vector<16x128xi32>
    %c40_i32 = arith.constant 40 : i32
    %15 = vector.broadcast %c40_i32 : i32 to vector<16x128xi32>
    %16 = arith.cmpi slt, %14, %15 : vector<16x128xi32>
    %cst_10 = arith.constant 0.000000e+00 : f32
    %17 = vector.broadcast %cst_10 : f32 to vector<16x128xf32>
    %18 = arith.select %16, %5, %17 : vector<16x128xi1>, vector<16x128xf32>
    %cst_11 = arith.constant dense<0.000000e+00> : vector<128xf32>
    %19 = vector.multi_reduction <add>, %18, %cst_11 [0] : vector<16x128xf32> to vector<128xf32>
    %20 = vector.shape_cast %19 : vector<128xf32> to vector<1x128xf32>
    %21 = arith.mulf %18, %18 : vector<16x128xf32>
    %cst_12 = arith.constant dense<0.000000e+00> : vector<128xf32>
    %22 = vector.multi_reduction <add>, %21, %cst_12 [0] : vector<16x128xf32> to vector<128xf32>
    %23 = vector.shape_cast %22 : vector<128xf32> to vector<1x128xf32>
    %c16_i32_13 = arith.constant 16 : i32
    %24 = arith.muli %arg0, %c16_i32_13 : i32
    %25 = tpu.iota {dimensions = array<i32: 0>} : vector<16x128xi32>
    %26 = vector.broadcast %24 : i32 to vector<16x128xi32>
    %27 = arith.addi %26, %25 : vector<16x128xi32>
    %c40_i32_14 = arith.constant 40 : i32
    %28 = vector.broadcast %c40_i32_14 : i32 to vector<16x128xi32>
    %29 = arith.cmpi slt, %27, %28 : vector<16x128xi32>
    %cst_15 = arith.constant 0.000000e+00 : f32
    %30 = vector.broadcast %cst_15 : f32 to vector<16x128xf32>
    %31 = arith.select %29, %10, %30 : vector<16x128xi1>, vector<16x128xf32>
    %cst_16 = arith.constant dense<0.000000e+00> : vector<128xf32>
    %32 = vector.multi_reduction <add>, %31, %cst_16 [0] : vector<16x128xf32> to vector<128xf32>
    %33 = vector.shape_cast %32 : vector<128xf32> to vector<1x128xf32>
    %34 = arith.mulf %31, %31 : vector<16x128xf32>
    %cst_17 = arith.constant dense<0.000000e+00> : vector<128xf32>
    %35 = vector.multi_reduction <add>, %34, %cst_17 [0] : vector<16x128xf32> to vector<128xf32>
    %36 = vector.shape_cast %35 : vector<128xf32> to vector<1x128xf32>
    %c0_18 = arith.constant 0 : index
    %c0_19 = arith.constant 0 : index
    %c0_20 = arith.constant 0 : index
    %37 = vector.load %arg6[%c0_18, %c0_19, %c0_20] : memref<1x1x512xf32, #tpu.memory_space<vmem>>, vector<1x1x128xf32>
    %38 = vector.shape_cast %37 : vector<1x1x128xf32> to vector<1x128xf32>
    %39 = vector.shape_cast %20 : vector<1x128xf32> to vector<1x1x128xf32>
    tpu.vector_store %arg6[%c0_18, %c0_19, %c0_20], %39 {strides = array<i32>} : memref<1x1x512xf32, #tpu.memory_space<vmem>>, vector<1x1x128xf32>,
    %c0_21 = arith.constant 0 : index
    %c0_22 = arith.constant 0 : index
    %c128 = arith.constant 128 : index
    %40 = vector.load %arg6[%c0_21, %c0_22, %c128] : memref<1x1x512xf32, #tpu.memory_space<vmem>>, vector<1x1x128xf32>
    %41 = vector.shape_cast %40 : vector<1x1x128xf32> to vector<1x128xf32>
    %42 = vector.shape_cast %23 : vector<1x128xf32> to vector<1x1x128xf32>
    tpu.vector_store %arg6[%c0_21, %c0_22, %c128], %42 {strides = array<i32>} : memref<1x1x512xf32, #tpu.memory_space<vmem>>, vector<1x1x128xf32>,
    %c0_23 = arith.constant 0 : index
    %c0_24 = arith.constant 0 : index
    %c256 = arith.constant 256 : index
    %43 = vector.load %arg6[%c0_23, %c0_24, %c256] : memref<1x1x512xf32, #tpu.memory_space<vmem>>, vector<1x1x128xf32>
    %44 = vector.shape_cast %43 : vector<1x1x128xf32> to vector<1x128xf32>
    %45 = vector.shape_cast %33 : vector<1x128xf32> to vector<1x1x128xf32>
    tpu.vector_store %arg6[%c0_23, %c0_24, %c256], %45 {strides = array<i32>} : memref<1x1x512xf32, #tpu.memory_space<vmem>>, vector<1x1x128xf32>,
    %c0_25 = arith.constant 0 : index
    %c0_26 = arith.constant 0 : index
    %c384 = arith.constant 384 : index
    %46 = vector.load %arg6[%c0_25, %c0_26, %c384] : memref<1x1x512xf32, #tpu.memory_space<vmem>>, vector<1x1x128xf32>
    %47 = vector.shape_cast %46 : vector<1x1x128xf32> to vector<1x128xf32>
    %48 = vector.shape_cast %36 : vector<1x128xf32> to vector<1x1x128xf32>
    tpu.vector_store %arg6[%c0_25, %c0_26, %c384], %48 {strides = array<i32>} : memref<1x1x512xf32, #tpu.memory_space<vmem>>, vector<1x1x128xf32>,
    return
  }
  func.func @transform_0(%arg0: i32) -> (i32, i32) {
    %c0_i32 = arith.constant 0 : i32
    %c0_i32_0 = arith.constant 0 : i32
    return %arg0, %c0_i32 : i32, i32
  }
  func.func @transform_1(%arg0: i32) -> (i32, i32) {
    %c0_i32 = arith.constant 0 : i32
    %c0_i32_0 = arith.constant 0 : i32
    return %arg0, %c0_i32 : i32, i32
  }
  func.func @transform_2(%arg0: i32) -> (i32, i32) {
    %c0_i32 = arith.constant 0 : i32
    %c0_i32_0 = arith.constant 0 : i32
    %c0_i32_1 = arith.constant 0 : i32
    return %c0_i32, %c0_i32_0 : i32, i32
  }
  func.func @transform_3(%arg0: i32) -> (i32, i32) {
    %c0_i32 = arith.constant 0 : i32
    %c0_i32_0 = arith.constant 0 : i32
    %c0_i32_1 = arith.constant 0 : i32
    return %c0_i32, %c0_i32_0 : i32, i32
  }
  func.func @transform_4(%arg0: i32) -> (i32, i32) {
    %c0_i32 = arith.constant 0 : i32
    %c0_i32_0 = arith.constant 0 : i32
    %c0_i32_1 = arith.constant 0 : i32
    return %c0_i32, %c0_i32_0 : i32, i32
  }
  func.func @transform_5(%arg0: i32) -> (i32, i32, i32) {
    %c0_i32 = arith.constant 0 : i32
    %c0_i32_0 = arith.constant 0 : i32
    %c0_i32_1 = arith.constant 0 : i32
    return %arg0, %c0_i32, %c0_i32_0 : i32, i32, i32
  }
}

module attributes {stable_mosaic.version = 11 : i64} {
  func.func @_gate_fc1_kernel(%arg0: i32, %arg1: memref<16x128xf32, #tpu.memory_space<vmem>>, %arg2: memref<16x128xf32, #tpu.memory_space<vmem>>, %arg3: memref<128x128xbf16, #tpu.memory_space<vmem>>, %arg4: memref<128x128xbf16, #tpu.memory_space<vmem>>, %arg5: memref<1x128xf32, #tpu.memory_space<vmem>>, %arg6: memref<1x128xf32, #tpu.memory_space<vmem>>, %arg7: memref<1x128xf32, #tpu.memory_space<vmem>>, %arg8: memref<1x128xf32, #tpu.memory_space<vmem>>, %arg9: memref<1x128xf32, #tpu.memory_space<vmem>>, %arg10: memref<128x128xbf16, #tpu.memory_space<vmem>>, %arg11: memref<1x128xf32, #tpu.memory_space<vmem>>, %arg12: memref<16x128xbf16, #tpu.memory_space<vmem>>, %arg13: memref<1x1x256xf32, #tpu.memory_space<vmem>>) attributes {dimension_semantics = [#tpu.dimension_semantics<parallel>], iteration_bounds = array<i64: 3>, scalar_prefetch = 0 : i64, scratch_operands = 0 : i64, tpu.core_type = #tpu.core_type<tc>, window_params = [{transform_indices = @transform_0, window_bounds = array<i64: 16, 128>}, {transform_indices = @transform_1, window_bounds = array<i64: 16, 128>}, {pipeline_mode = #tpu.pipeline_mode<synchronous>, transform_indices = @transform_2, window_bounds = array<i64: 128, 128>}, {pipeline_mode = #tpu.pipeline_mode<synchronous>, transform_indices = @transform_3, window_bounds = array<i64: 128, 128>}, {pipeline_mode = #tpu.pipeline_mode<synchronous>, transform_indices = @transform_4, window_bounds = array<i64: 1, 128>}, {pipeline_mode = #tpu.pipeline_mode<synchronous>, transform_indices = @transform_5, window_bounds = array<i64: 1, 128>}, {pipeline_mode = #tpu.pipeline_mode<synchronous>, transform_indices = @transform_6, window_bounds = array<i64: 1, 128>}, {pipeline_mode = #tpu.pipeline_mode<synchronous>, transform_indices = @transform_7, window_bounds = array<i64: 1, 128>}, {pipeline_mode = #tpu.pipeline_mode<synchronous>, transform_indices = @transform_8, window_bounds = array<i64: 1, 128>}, {pipeline_mode = #tpu.pipeline_mode<synchronous>, transform_indices = @transform_9, window_bounds = array<i64: 128, 128>}, {pipeline_mode = #tpu.pipeline_mode<synchronous>, transform_indices = @transform_10, window_bounds = array<i64: 1, 128>}, {transform_indices = @transform_11, window_bounds = array<i64: 16, 128>}, {transform_indices = @transform_12, window_bounds = array<i64: 1, 1, 256>}]} {
    %c0 = arith.constant 0 : index
    %c0_0 = arith.constant 0 : index
    %0 = vector.load %arg1[%c0, %c0_0] : memref<16x128xf32, #tpu.memory_space<vmem>>, vector<16x128xf32>
    %c0_1 = arith.constant 0 : index
    %c0_2 = arith.constant 0 : index
    %1 = vector.load %arg2[%c0_1, %c0_2] : memref<16x128xf32, #tpu.memory_space<vmem>>, vector<16x128xf32>
    %2 = arith.truncf %0 : vector<16x128xf32> to vector<16x128xbf16>
    %c0_3 = arith.constant 0 : index
    %c0_4 = arith.constant 0 : index
    %3 = vector.load %arg3[%c0_3, %c0_4] : memref<128x128xbf16, #tpu.memory_space<vmem>>, vector<128x128xbf16>
    %cst = arith.constant dense<0.000000e+00> : vector<16x128xf32>
    %4 = tpu.matmul %2, %3, %cst {dimension_numbers = #tpu.dot_dimension_numbers<[1], [0], [0], [1], [0, 0, 1, 1], [], []>} : vector<16x128xbf16>, vector<128x128xbf16>, vector<16x128xf32> -> vector<16x128xf32>
    %5 = arith.truncf %1 : vector<16x128xf32> to vector<16x128xbf16>
    %c0_5 = arith.constant 0 : index
    %c0_6 = arith.constant 0 : index
    %6 = vector.load %arg4[%c0_5, %c0_6] : memref<128x128xbf16, #tpu.memory_space<vmem>>, vector<128x128xbf16>
    %cst_7 = arith.constant dense<0.000000e+00> : vector<16x128xf32>
    %7 = tpu.matmul %5, %6, %cst_7 {dimension_numbers = #tpu.dot_dimension_numbers<[1], [0], [0], [1], [0, 0, 1, 1], [], []>} : vector<16x128xbf16>, vector<128x128xbf16>, vector<16x128xf32> -> vector<16x128xf32>
    %c0_8 = arith.constant 0 : index
    %c0_9 = arith.constant 0 : index
    %8 = vector.load %arg5[%c0_8, %c0_9] : memref<1x128xf32, #tpu.memory_space<vmem>>, vector<1x128xf32>
    %9 = vector.broadcast %8 : vector<1x128xf32> to vector<16x128xf32>
    %10 = arith.addf %7, %9 : vector<16x128xf32>
    %c0_10 = arith.constant 0 : index
    %c0_11 = arith.constant 0 : index
    %11 = vector.load %arg6[%c0_10, %c0_11] : memref<1x128xf32, #tpu.memory_space<vmem>>, vector<1x128xf32>
    %12 = vector.broadcast %11 : vector<1x128xf32> to vector<16x128xf32>
    %13 = arith.mulf %4, %12 : vector<16x128xf32>
    %c0_12 = arith.constant 0 : index
    %c0_13 = arith.constant 0 : index
    %14 = vector.load %arg7[%c0_12, %c0_13] : memref<1x128xf32, #tpu.memory_space<vmem>>, vector<1x128xf32>
    %15 = vector.broadcast %14 : vector<1x128xf32> to vector<16x128xf32>
    %16 = arith.addf %13, %15 : vector<16x128xf32>
    %c0_14 = arith.constant 0 : index
    %c0_15 = arith.constant 0 : index
    %17 = vector.load %arg8[%c0_14, %c0_15] : memref<1x128xf32, #tpu.memory_space<vmem>>, vector<1x128xf32>
    %18 = vector.broadcast %17 : vector<1x128xf32> to vector<16x128xf32>
    %19 = arith.mulf %10, %18 : vector<16x128xf32>
    %c0_16 = arith.constant 0 : index
    %c0_17 = arith.constant 0 : index
    %20 = vector.load %arg9[%c0_16, %c0_17] : memref<1x128xf32, #tpu.memory_space<vmem>>, vector<1x128xf32>
    %21 = vector.broadcast %20 : vector<1x128xf32> to vector<16x128xf32>
    %22 = arith.addf %19, %21 : vector<16x128xf32>
    %23 = arith.addf %16, %22 : vector<16x128xf32>
    %24 = arith.negf %23 : vector<16x128xf32>
    %25 = math.exp %24 : vector<16x128xf32>
    %cst_18 = arith.constant 1.000000e+00 : f32
    %26 = vector.broadcast %cst_18 : f32 to vector<16x128xf32>
    %27 = arith.addf %26, %25 : vector<16x128xf32>
    %28 = arith.divf %26, %27 : vector<16x128xf32>
    %29 = arith.mulf %28, %0 : vector<16x128xf32>
    %cst_19 = arith.constant 1.000000e+00 : f32
    %30 = vector.broadcast %cst_19 : f32 to vector<16x128xf32>
    %31 = arith.subf %30, %28 : vector<16x128xf32>
    %32 = arith.mulf %31, %1 : vector<16x128xf32>
    %33 = arith.addf %29, %32 : vector<16x128xf32>
    %34 = arith.truncf %33 : vector<16x128xf32> to vector<16x128xbf16>
    %c0_20 = arith.constant 0 : index
    %c0_21 = arith.constant 0 : index
    %35 = vector.load %arg10[%c0_20, %c0_21] : memref<128x128xbf16, #tpu.memory_space<vmem>>, vector<128x128xbf16>
    %cst_22 = arith.constant dense<0.000000e+00> : vector<16x128xf32>
    %36 = tpu.matmul %34, %35, %cst_22 {dimension_numbers = #tpu.dot_dimension_numbers<[1], [0], [0], [1], [0, 0, 1, 1], [], []>} : vector<16x128xbf16>, vector<128x128xbf16>, vector<16x128xf32> -> vector<16x128xf32>
    %c0_23 = arith.constant 0 : index
    %c0_24 = arith.constant 0 : index
    %37 = vector.load %arg11[%c0_23, %c0_24] : memref<1x128xf32, #tpu.memory_space<vmem>>, vector<1x128xf32>
    %38 = vector.broadcast %37 : vector<1x128xf32> to vector<16x128xf32>
    %39 = arith.addf %36, %38 : vector<16x128xf32>
    %40 = arith.truncf %39 : vector<16x128xf32> to vector<16x128xbf16>
    %c0_25 = arith.constant 0 : index
    %c0_26 = arith.constant 0 : index
    %41 = vector.load %arg12[%c0_25, %c0_26] : memref<16x128xbf16, #tpu.memory_space<vmem>>, vector<16x128xbf16>
    tpu.vector_store %arg12[%c0_25, %c0_26], %40 {strides = array<i32>} : memref<16x128xbf16, #tpu.memory_space<vmem>>, vector<16x128xbf16>,
    %c16_i32 = arith.constant 16 : i32
    %42 = arith.muli %arg0, %c16_i32 : i32
    %43 = tpu.iota {dimensions = array<i32: 0>} : vector<16x128xi32>
    %44 = vector.broadcast %42 : i32 to vector<16x128xi32>
    %45 = arith.addi %44, %43 : vector<16x128xi32>
    %c40_i32 = arith.constant 40 : i32
    %46 = vector.broadcast %c40_i32 : i32 to vector<16x128xi32>
    %47 = arith.cmpi slt, %45, %46 : vector<16x128xi32>
    %cst_27 = arith.constant 0.000000e+00 : f32
    %48 = vector.broadcast %cst_27 : f32 to vector<16x128xf32>
    %49 = arith.select %47, %39, %48 : vector<16x128xi1>, vector<16x128xf32>
    %cst_28 = arith.constant dense<0.000000e+00> : vector<128xf32>
    %50 = vector.multi_reduction <add>, %49, %cst_28 [0] : vector<16x128xf32> to vector<128xf32>
    %51 = vector.shape_cast %50 : vector<128xf32> to vector<1x128xf32>
    %52 = arith.mulf %49, %49 : vector<16x128xf32>
    %cst_29 = arith.constant dense<0.000000e+00> : vector<128xf32>
    %53 = vector.multi_reduction <add>, %52, %cst_29 [0] : vector<16x128xf32> to vector<128xf32>
    %54 = vector.shape_cast %53 : vector<128xf32> to vector<1x128xf32>
    %c0_30 = arith.constant 0 : index
    %c0_31 = arith.constant 0 : index
    %c0_32 = arith.constant 0 : index
    %55 = vector.load %arg13[%c0_30, %c0_31, %c0_32] : memref<1x1x256xf32, #tpu.memory_space<vmem>>, vector<1x1x128xf32>
    %56 = vector.shape_cast %55 : vector<1x1x128xf32> to vector<1x128xf32>
    %57 = vector.shape_cast %51 : vector<1x128xf32> to vector<1x1x128xf32>
    tpu.vector_store %arg13[%c0_30, %c0_31, %c0_32], %57 {strides = array<i32>} : memref<1x1x256xf32, #tpu.memory_space<vmem>>, vector<1x1x128xf32>,
    %c0_33 = arith.constant 0 : index
    %c0_34 = arith.constant 0 : index
    %c128 = arith.constant 128 : index
    %58 = vector.load %arg13[%c0_33, %c0_34, %c128] : memref<1x1x256xf32, #tpu.memory_space<vmem>>, vector<1x1x128xf32>
    %59 = vector.shape_cast %58 : vector<1x1x128xf32> to vector<1x128xf32>
    %60 = vector.shape_cast %54 : vector<1x128xf32> to vector<1x1x128xf32>
    tpu.vector_store %arg13[%c0_33, %c0_34, %c128], %60 {strides = array<i32>} : memref<1x1x256xf32, #tpu.memory_space<vmem>>, vector<1x1x128xf32>,
    return
  }
  func.func @transform_0(%arg0: i32) -> (i32, i32) {
    %c0_i32 = arith.constant 0 : i32
    %c0_i32_0 = arith.constant 0 : i32
    return %arg0, %c0_i32 : i32, i32
  }
  func.func @transform_1(%arg0: i32) -> (i32, i32) {
    %c0_i32 = arith.constant 0 : i32
    %c0_i32_0 = arith.constant 0 : i32
    return %arg0, %c0_i32 : i32, i32
  }
  func.func @transform_2(%arg0: i32) -> (i32, i32) {
    %c0_i32 = arith.constant 0 : i32
    %c0_i32_0 = arith.constant 0 : i32
    %c0_i32_1 = arith.constant 0 : i32
    return %c0_i32, %c0_i32_0 : i32, i32
  }
  func.func @transform_3(%arg0: i32) -> (i32, i32) {
    %c0_i32 = arith.constant 0 : i32
    %c0_i32_0 = arith.constant 0 : i32
    %c0_i32_1 = arith.constant 0 : i32
    return %c0_i32, %c0_i32_0 : i32, i32
  }
  func.func @transform_4(%arg0: i32) -> (i32, i32) {
    %c0_i32 = arith.constant 0 : i32
    %c0_i32_0 = arith.constant 0 : i32
    %c0_i32_1 = arith.constant 0 : i32
    return %c0_i32, %c0_i32_0 : i32, i32
  }
  func.func @transform_5(%arg0: i32) -> (i32, i32) {
    %c0_i32 = arith.constant 0 : i32
    %c0_i32_0 = arith.constant 0 : i32
    %c0_i32_1 = arith.constant 0 : i32
    return %c0_i32, %c0_i32_0 : i32, i32
  }
  func.func @transform_6(%arg0: i32) -> (i32, i32) {
    %c0_i32 = arith.constant 0 : i32
    %c0_i32_0 = arith.constant 0 : i32
    %c0_i32_1 = arith.constant 0 : i32
    return %c0_i32, %c0_i32_0 : i32, i32
  }
  func.func @transform_7(%arg0: i32) -> (i32, i32) {
    %c0_i32 = arith.constant 0 : i32
    %c0_i32_0 = arith.constant 0 : i32
    %c0_i32_1 = arith.constant 0 : i32
    return %c0_i32, %c0_i32_0 : i32, i32
  }
  func.func @transform_8(%arg0: i32) -> (i32, i32) {
    %c0_i32 = arith.constant 0 : i32
    %c0_i32_0 = arith.constant 0 : i32
    %c0_i32_1 = arith.constant 0 : i32
    return %c0_i32, %c0_i32_0 : i32, i32
  }
  func.func @transform_9(%arg0: i32) -> (i32, i32) {
    %c0_i32 = arith.constant 0 : i32
    %c0_i32_0 = arith.constant 0 : i32
    %c0_i32_1 = arith.constant 0 : i32
    return %c0_i32, %c0_i32_0 : i32, i32
  }
  func.func @transform_10(%arg0: i32) -> (i32, i32) {
    %c0_i32 = arith.constant 0 : i32
    %c0_i32_0 = arith.constant 0 : i32
    %c0_i32_1 = arith.constant 0 : i32
    return %c0_i32, %c0_i32_0 : i32, i32
  }
  func.func @transform_11(%arg0: i32) -> (i32, i32) {
    %c0_i32 = arith.constant 0 : i32
    %c0_i32_0 = arith.constant 0 : i32
    return %arg0, %c0_i32 : i32, i32
  }
  func.func @transform_12(%arg0: i32) -> (i32, i32, i32) {
    %c0_i32 = arith.constant 0 : i32
    %c0_i32_0 = arith.constant 0 : i32
    %c0_i32_1 = arith.constant 0 : i32
    return %arg0, %c0_i32, %c0_i32_0 : i32, i32, i32
  }
}

module attributes {stable_mosaic.version = 11 : i64} {
  func.func @_fc2_apply_kernel(%arg0: i32, %arg1: memref<16x128xbf16, #tpu.memory_space<vmem>>, %arg2: memref<1x128xf32, #tpu.memory_space<vmem>>, %arg3: memref<1x128xf32, #tpu.memory_space<vmem>>, %arg4: memref<128x128xbf16, #tpu.memory_space<vmem>>, %arg5: memref<1x128xf32, #tpu.memory_space<vmem>>, %arg6: memref<1x128xf32, #tpu.memory_space<vmem>>, %arg7: memref<1x128xf32, #tpu.memory_space<vmem>>, %arg8: memref<16x128xf32, #tpu.memory_space<vmem>>) attributes {dimension_semantics = [#tpu.dimension_semantics<parallel>], iteration_bounds = array<i64: 3>, scalar_prefetch = 0 : i64, scratch_operands = 0 : i64, tpu.core_type = #tpu.core_type<tc>, window_params = [{transform_indices = @transform_0, window_bounds = array<i64: 16, 128>}, {pipeline_mode = #tpu.pipeline_mode<synchronous>, transform_indices = @transform_1, window_bounds = array<i64: 1, 128>}, {pipeline_mode = #tpu.pipeline_mode<synchronous>, transform_indices = @transform_2, window_bounds = array<i64: 1, 128>}, {pipeline_mode = #tpu.pipeline_mode<synchronous>, transform_indices = @transform_3, window_bounds = array<i64: 128, 128>}, {pipeline_mode = #tpu.pipeline_mode<synchronous>, transform_indices = @transform_4, window_bounds = array<i64: 1, 128>}, {pipeline_mode = #tpu.pipeline_mode<synchronous>, transform_indices = @transform_5, window_bounds = array<i64: 1, 128>}, {pipeline_mode = #tpu.pipeline_mode<synchronous>, transform_indices = @transform_6, window_bounds = array<i64: 1, 128>}, {transform_indices = @transform_7, window_bounds = array<i64: 16, 128>}]} {
    %c0 = arith.constant 0 : index
    %c0_0 = arith.constant 0 : index
    %0 = vector.load %arg1[%c0, %c0_0] : memref<16x128xbf16, #tpu.memory_space<vmem>>, vector<16x128xbf16>
    %1 = arith.extf %0 : vector<16x128xbf16> to vector<16x128xf32>
    %c0_1 = arith.constant 0 : index
    %c0_2 = arith.constant 0 : index
    %2 = vector.load %arg2[%c0_1, %c0_2] : memref<1x128xf32, #tpu.memory_space<vmem>>, vector<1x128xf32>
    %3 = vector.broadcast %2 : vector<1x128xf32> to vector<16x128xf32>
    %4 = arith.mulf %1, %3 : vector<16x128xf32>
    %c0_3 = arith.constant 0 : index
    %c0_4 = arith.constant 0 : index
    %5 = vector.load %arg3[%c0_3, %c0_4] : memref<1x128xf32, #tpu.memory_space<vmem>>, vector<1x128xf32>
    %6 = vector.broadcast %5 : vector<1x128xf32> to vector<16x128xf32>
    %7 = arith.addf %4, %6 : vector<16x128xf32>
    %cst = arith.constant 0.000000e+00 : f32
    %8 = vector.broadcast %cst : f32 to vector<16x128xf32>
    %9 = arith.maximumf %7, %8 : vector<16x128xf32>
    %10 = arith.truncf %9 : vector<16x128xf32> to vector<16x128xbf16>
    %c0_5 = arith.constant 0 : index
    %c0_6 = arith.constant 0 : index
    %11 = vector.load %arg4[%c0_5, %c0_6] : memref<128x128xbf16, #tpu.memory_space<vmem>>, vector<128x128xbf16>
    %cst_7 = arith.constant dense<0.000000e+00> : vector<16x128xf32>
    %12 = tpu.matmul %10, %11, %cst_7 {dimension_numbers = #tpu.dot_dimension_numbers<[1], [0], [0], [1], [0, 0, 1, 1], [], []>} : vector<16x128xbf16>, vector<128x128xbf16>, vector<16x128xf32> -> vector<16x128xf32>
    %c0_8 = arith.constant 0 : index
    %c0_9 = arith.constant 0 : index
    %13 = vector.load %arg5[%c0_8, %c0_9] : memref<1x128xf32, #tpu.memory_space<vmem>>, vector<1x128xf32>
    %14 = vector.broadcast %13 : vector<1x128xf32> to vector<16x128xf32>
    %15 = arith.addf %12, %14 : vector<16x128xf32>
    %c0_10 = arith.constant 0 : index
    %c0_11 = arith.constant 0 : index
    %16 = vector.load %arg6[%c0_10, %c0_11] : memref<1x128xf32, #tpu.memory_space<vmem>>, vector<1x128xf32>
    %17 = vector.broadcast %16 : vector<1x128xf32> to vector<16x128xf32>
    %18 = arith.mulf %15, %17 : vector<16x128xf32>
    %c0_12 = arith.constant 0 : index
    %c0_13 = arith.constant 0 : index
    %19 = vector.load %arg7[%c0_12, %c0_13] : memref<1x128xf32, #tpu.memory_space<vmem>>, vector<1x128xf32>
    %20 = vector.broadcast %19 : vector<1x128xf32> to vector<16x128xf32>
    %21 = arith.addf %18, %20 : vector<16x128xf32>
    %c0_14 = arith.constant 0 : index
    %c0_15 = arith.constant 0 : index
    %22 = vector.load %arg8[%c0_14, %c0_15] : memref<16x128xf32, #tpu.memory_space<vmem>>, vector<16x128xf32>
    tpu.vector_store %arg8[%c0_14, %c0_15], %21 {strides = array<i32>} : memref<16x128xf32, #tpu.memory_space<vmem>>, vector<16x128xf32>,
    return
  }
  func.func @transform_0(%arg0: i32) -> (i32, i32) {
    %c0_i32 = arith.constant 0 : i32
    %c0_i32_0 = arith.constant 0 : i32
    return %arg0, %c0_i32 : i32, i32
  }
  func.func @transform_1(%arg0: i32) -> (i32, i32) {
    %c0_i32 = arith.constant 0 : i32
    %c0_i32_0 = arith.constant 0 : i32
    %c0_i32_1 = arith.constant 0 : i32
    return %c0_i32, %c0_i32_0 : i32, i32
  }
  func.func @transform_2(%arg0: i32) -> (i32, i32) {
    %c0_i32 = arith.constant 0 : i32
    %c0_i32_0 = arith.constant 0 : i32
    %c0_i32_1 = arith.constant 0 : i32
    return %c0_i32, %c0_i32_0 : i32, i32
  }
  func.func @transform_3(%arg0: i32) -> (i32, i32) {
    %c0_i32 = arith.constant 0 : i32
    %c0_i32_0 = arith.constant 0 : i32
    %c0_i32_1 = arith.constant 0 : i32
    return %c0_i32, %c0_i32_0 : i32, i32
  }
  func.func @transform_4(%arg0: i32) -> (i32, i32) {
    %c0_i32 = arith.constant 0 : i32
    %c0_i32_0 = arith.constant 0 : i32
    %c0_i32_1 = arith.constant 0 : i32
    return %c0_i32, %c0_i32_0 : i32, i32
  }
  func.func @transform_5(%arg0: i32) -> (i32, i32) {
    %c0_i32 = arith.constant 0 : i32
    %c0_i32_0 = arith.constant 0 : i32
    %c0_i32_1 = arith.constant 0 : i32
    return %c0_i32, %c0_i32_0 : i32, i32
  }
  func.func @transform_6(%arg0: i32) -> (i32, i32) {
    %c0_i32 = arith.constant 0 : i32
    %c0_i32_0 = arith.constant 0 : i32
    %c0_i32_1 = arith.constant 0 : i32
    return %c0_i32, %c0_i32_0 : i32, i32
  }
  func.func @transform_7(%arg0: i32) -> (i32, i32) {
    %c0_i32 = arith.constant 0 : i32
    %c0_i32_0 = arith.constant 0 : i32
    return %arg0, %c0_i32 : i32, i32
  }
}

module attributes {stable_mosaic.version = 11 : i64} {
  func.func @_fc2_stats_kernel(%arg0: i32, %arg1: memref<16x128xbf16, #tpu.memory_space<vmem>>, %arg2: memref<1x128xf32, #tpu.memory_space<vmem>>, %arg3: memref<1x128xf32, #tpu.memory_space<vmem>>, %arg4: memref<128x128xbf16, #tpu.memory_space<vmem>>, %arg5: memref<1x128xf32, #tpu.memory_space<vmem>>, %arg6: memref<1x1x256xf32, #tpu.memory_space<vmem>>) attributes {dimension_semantics = [#tpu.dimension_semantics<parallel>], iteration_bounds = array<i64: 3>, scalar_prefetch = 0 : i64, scratch_operands = 0 : i64, tpu.core_type = #tpu.core_type<tc>, window_params = [{transform_indices = @transform_0, window_bounds = array<i64: 16, 128>}, {pipeline_mode = #tpu.pipeline_mode<synchronous>, transform_indices = @transform_1, window_bounds = array<i64: 1, 128>}, {pipeline_mode = #tpu.pipeline_mode<synchronous>, transform_indices = @transform_2, window_bounds = array<i64: 1, 128>}, {pipeline_mode = #tpu.pipeline_mode<synchronous>, transform_indices = @transform_3, window_bounds = array<i64: 128, 128>}, {pipeline_mode = #tpu.pipeline_mode<synchronous>, transform_indices = @transform_4, window_bounds = array<i64: 1, 128>}, {transform_indices = @transform_5, window_bounds = array<i64: 1, 1, 256>}]} {
    %c0 = arith.constant 0 : index
    %c0_0 = arith.constant 0 : index
    %0 = vector.load %arg1[%c0, %c0_0] : memref<16x128xbf16, #tpu.memory_space<vmem>>, vector<16x128xbf16>
    %1 = arith.extf %0 : vector<16x128xbf16> to vector<16x128xf32>
    %c0_1 = arith.constant 0 : index
    %c0_2 = arith.constant 0 : index
    %2 = vector.load %arg2[%c0_1, %c0_2] : memref<1x128xf32, #tpu.memory_space<vmem>>, vector<1x128xf32>
    %3 = vector.broadcast %2 : vector<1x128xf32> to vector<16x128xf32>
    %4 = arith.mulf %1, %3 : vector<16x128xf32>
    %c0_3 = arith.constant 0 : index
    %c0_4 = arith.constant 0 : index
    %5 = vector.load %arg3[%c0_3, %c0_4] : memref<1x128xf32, #tpu.memory_space<vmem>>, vector<1x128xf32>
    %6 = vector.broadcast %5 : vector<1x128xf32> to vector<16x128xf32>
    %7 = arith.addf %4, %6 : vector<16x128xf32>
    %cst = arith.constant 0.000000e+00 : f32
    %8 = vector.broadcast %cst : f32 to vector<16x128xf32>
    %9 = arith.maximumf %7, %8 : vector<16x128xf32>
    %10 = arith.truncf %9 : vector<16x128xf32> to vector<16x128xbf16>
    %c0_5 = arith.constant 0 : index
    %c0_6 = arith.constant 0 : index
    %11 = vector.load %arg4[%c0_5, %c0_6] : memref<128x128xbf16, #tpu.memory_space<vmem>>, vector<128x128xbf16>
    %cst_7 = arith.constant dense<0.000000e+00> : vector<16x128xf32>
    %12 = tpu.matmul %10, %11, %cst_7 {dimension_numbers = #tpu.dot_dimension_numbers<[1], [0], [0], [1], [0, 0, 1, 1], [], []>} : vector<16x128xbf16>, vector<128x128xbf16>, vector<16x128xf32> -> vector<16x128xf32>
    %c0_8 = arith.constant 0 : index
    %c0_9 = arith.constant 0 : index
    %13 = vector.load %arg5[%c0_8, %c0_9] : memref<1x128xf32, #tpu.memory_space<vmem>>, vector<1x128xf32>
    %14 = vector.broadcast %13 : vector<1x128xf32> to vector<16x128xf32>
    %15 = arith.addf %12, %14 : vector<16x128xf32>
    %c16_i32 = arith.constant 16 : i32
    %16 = arith.muli %arg0, %c16_i32 : i32
    %17 = tpu.iota {dimensions = array<i32: 0>} : vector<16x128xi32>
    %18 = vector.broadcast %16 : i32 to vector<16x128xi32>
    %19 = arith.addi %18, %17 : vector<16x128xi32>
    %c40_i32 = arith.constant 40 : i32
    %20 = vector.broadcast %c40_i32 : i32 to vector<16x128xi32>
    %21 = arith.cmpi slt, %19, %20 : vector<16x128xi32>
    %cst_10 = arith.constant 0.000000e+00 : f32
    %22 = vector.broadcast %cst_10 : f32 to vector<16x128xf32>
    %23 = arith.select %21, %15, %22 : vector<16x128xi1>, vector<16x128xf32>
    %cst_11 = arith.constant dense<0.000000e+00> : vector<128xf32>
    %24 = vector.multi_reduction <add>, %23, %cst_11 [0] : vector<16x128xf32> to vector<128xf32>
    %25 = vector.shape_cast %24 : vector<128xf32> to vector<1x128xf32>
    %26 = arith.mulf %23, %23 : vector<16x128xf32>
    %cst_12 = arith.constant dense<0.000000e+00> : vector<128xf32>
    %27 = vector.multi_reduction <add>, %26, %cst_12 [0] : vector<16x128xf32> to vector<128xf32>
    %28 = vector.shape_cast %27 : vector<128xf32> to vector<1x128xf32>
    %c0_13 = arith.constant 0 : index
    %c0_14 = arith.constant 0 : index
    %c0_15 = arith.constant 0 : index
    %29 = vector.load %arg6[%c0_13, %c0_14, %c0_15] : memref<1x1x256xf32, #tpu.memory_space<vmem>>, vector<1x1x128xf32>
    %30 = vector.shape_cast %29 : vector<1x1x128xf32> to vector<1x128xf32>
    %31 = vector.shape_cast %25 : vector<1x128xf32> to vector<1x1x128xf32>
    tpu.vector_store %arg6[%c0_13, %c0_14, %c0_15], %31 {strides = array<i32>} : memref<1x1x256xf32, #tpu.memory_space<vmem>>, vector<1x1x128xf32>,
    %c0_16 = arith.constant 0 : index
    %c0_17 = arith.constant 0 : index
    %c128 = arith.constant 128 : index
    %32 = vector.load %arg6[%c0_16, %c0_17, %c128] : memref<1x1x256xf32, #tpu.memory_space<vmem>>, vector<1x1x128xf32>
    %33 = vector.shape_cast %32 : vector<1x1x128xf32> to vector<1x128xf32>
    %34 = vector.shape_cast %28 : vector<1x128xf32> to vector<1x1x128xf32>
    tpu.vector_store %arg6[%c0_16, %c0_17, %c128], %34 {strides = array<i32>} : memref<1x1x256xf32, #tpu.memory_space<vmem>>, vector<1x1x128xf32>,
    return
  }
  func.func @transform_0(%arg0: i32) -> (i32, i32) {
    %c0_i32 = arith.constant 0 : i32
    %c0_i32_0 = arith.constant 0 : i32
    return %arg0, %c0_i32 : i32, i32
  }
  func.func @transform_1(%arg0: i32) -> (i32, i32) {
    %c0_i32 = arith.constant 0 : i32
    %c0_i32_0 = arith.constant 0 : i32
    %c0_i32_1 = arith.constant 0 : i32
    return %c0_i32, %c0_i32_0 : i32, i32
  }
  func.func @transform_2(%arg0: i32) -> (i32, i32) {
    %c0_i32 = arith.constant 0 : i32
    %c0_i32_0 = arith.constant 0 : i32
    %c0_i32_1 = arith.constant 0 : i32
    return %c0_i32, %c0_i32_0 : i32, i32
  }
  func.func @transform_3(%arg0: i32) -> (i32, i32) {
    %c0_i32 = arith.constant 0 : i32
    %c0_i32_0 = arith.constant 0 : i32
    %c0_i32_1 = arith.constant 0 : i32
    return %c0_i32, %c0_i32_0 : i32, i32
  }
  func.func @transform_4(%arg0: i32) -> (i32, i32) {
    %c0_i32 = arith.constant 0 : i32
    %c0_i32_0 = arith.constant 0 : i32
    %c0_i32_1 = arith.constant 0 : i32
    return %c0_i32, %c0_i32_0 : i32, i32
  }
  func.func @transform_5(%arg0: i32) -> (i32, i32, i32) {
    %c0_i32 = arith.constant 0 : i32
    %c0_i32_0 = arith.constant 0 : i32
    %c0_i32_1 = arith.constant 0 : i32
    return %arg0, %c0_i32, %c0_i32_0 : i32, i32, i32
  }
}

</mosaic_0001>

<bundles_post_ra>
// kernel: tile.58
= control target key start
LH: loop header
LB: loop body
LE: loop exit
PB: predicated region body
PF: predicated region fallthrough
CT: control target
= control target key end

     0   :  { %s22_s0 = inlined_call_operand.vmem [shape: f32[16], index: 0, kind: input, shape index: {}]   ;;  %s23_s1 = inlined_call_operand.vmem [shape: f32[8,16], index: 1, kind: output, shape index: {}]  }
   0x1   :  { %v4_v0 = vld [vmem:[%s22_s0] ss:$0 sm:$0xff] }
   0x2   :  { %5 = vst [vmem:[%s23_s1] sm:$0xff] %v4_v0 }

// kernel: tile.59
= control target key start
LH: loop header
LB: loop body
LE: loop exit
PB: predicated region body
PF: predicated region fallthrough
CT: control target
= control target key end

     0   :  { %s67_s10 = smov 112   ;;  %s68_s11 = smov 80   ;;  %vm3_vm0 = vcmask 130048   ;;  %vm9_vm1 = vcmask 1048448   ;;  %vm15_vm2 = vcmask 917248   ;;  %vm21_vm3 = vcmask 786048   ;;  %s111_s0 = inlined_call_operand.vmem [shape: f32[8,16], index: 0, kind: input, shape index: {}]   ;;  %s112_s1 = inlined_call_operand.vmem [shape: f32[1,128], index: 1, kind: output, shape index: {}]  }
   0x1   :  { %v53_v0 = vld [vmem:[%s111_s0 + $0x7] sm:$0x1]   ;;  %v55_v1 = vld [vmem:[%s111_s0 + $0x5] sm:$0x1]   ;;  %v57_v2 = vld [vmem:[%s111_s0 + $0x3] sm:$0x1]  }
   0x2   :  { %7 = vrot.lane.b32.xlu0 %v53_v0, %s67_s10  ;;  %19 = vrot.lane.b32.xlu1 %v55_v1, %s68_s11  ;;  %s69_s14 = smov 48   ;;  %v54_v3 = vld [vmem:[%s111_s0 + $0x6] sm:$0x1]   ;;  %v56_v4 = vld [vmem:[%s111_s0 + $0x4] sm:$0x1]   ;;  %s70_s21 = smov 96  }
   0x3   :  { %31 = vrot.lane.b32.xlu2 %v57_v2, %s69_s14  ;;  %v58_v5 = vld [vmem:[%s111_s0 + $0x2] sm:$0x1]   ;;  %s71_s22 = smov 64   ;;  %s72_s23 = smov 32   ;;  %v59_v6 = vld [vmem:[%s111_s0 + $0x1] sm:$0x1]  }
   0x4   :  { %s73_s26 = smov 16   ;;  %v2_v7 = vld [vmem:[%s111_s0] sm:$0x1]   ;;  %vm27_vm4 = vcmask 654848   ;;  %vm33_vm5 = vcmask 523648   ;;  %vm39_vm6 = vcmask 392448  }
   0x5   :  { %4 = vst.msk [vmem:[#allocation0] sm:$0x1] %vm3_vm0, %v2_v7   ;;  %vm45_vm7 = vcmask 261248  }
   0xa   :  { %13 = vrot.lane.b32.xlu0 %v54_v3, %s70_s21  ;;  %25 = vrot.lane.b32.xlu1 %v56_v4, %s71_s22 }
   0xb   :  { %37 = vrot.lane.b32.xlu2 %v58_v5, %s72_s23 }
  0x12   :  { %43 = vrot.lane.b32.xlu0 %v59_v6, %s73_s26 }
  0x5d   :  { %v32_v8 = vpop.permute.xlu2 %31  }
  0x65   :  { %v38_v9 = vpop.permute.xlu2 %37  }
  0x74   :  { %v8_v10 = vpop.permute.xlu0 %7   ;;  %v20_v11 = vpop.permute.xlu1 %19  }
  0x75   :  { %10 = vst.msk [vmem:[#allocation0] sm:$0x1] %vm9_vm1, %v8_v10  }
  0x7c   :  { %v14_v12 = vpop.permute.xlu0 %13   ;;  %v26_v13 = vpop.permute.xlu1 %25  }
  0x7d   :  { %16 = vst.msk [vmem:[#allocation0] sm:$0x1] %vm15_vm2, %v14_v12  }
  0x7e   :  { %22 = vst.msk [vmem:[#allocation0] sm:$0x1] %vm21_vm3, %v20_v11  }
  0x7f   :  { %28 = vst.msk [vmem:[#allocation0] sm:$0x1] %vm27_vm4, %v26_v13  }
  0x80   :  { %34 = vst.msk [vmem:[#allocation0] sm:$0x1] %vm33_vm5, %v32_v8  }
  0x81   :  { %40 = vst.msk [vmem:[#allocation0] sm:$0x1] %vm39_vm6, %v38_v9  }
  0x84   :  { %v44_v14 = vpop.permute.xlu0 %43  }
  0x85   :  { %46 = vst.msk [vmem:[#allocation0] sm:$0x1] %vm45_vm7, %v44_v14  }
  0x8c   :  { %v49_v15 = vld [vmem:[#allocation0] sm:$0x1] }
  0x8d   :  { %52 = vst [vmem:[%s112_s1] sm:$0x1] %v49_v15 }

</bundles_post_ra>
